<compile_context>
chip_gen: v5e
topology: v5e:2x2
jax: 0.10.0
libtpu: 0.0.40
codegen_flags: <defaults>
</compile_context>

<pallas_src>
import jax
import jax.numpy as jnp
from jax.experimental import pallas as pl
from jax.experimental.pallas import tpu as pltpu

HID = 128   # padded hidden lane width
HEAD = 8    # padded head width (3 real outputs), sublane-aligned


def _round_up(n, m):
    return ((n + m - 1) // m) * m


def policy_net_kernel(x_ref, w1_ref, wslab_ref, bias_ref, mu_ref):
    cdt = w1_ref.dtype                       # MXU input dtype (f32 or bf16)

    b1 = bias_ref[0:1, :]                    # (1, 128) each, f32
    b2 = bias_ref[1:2, :]
    b3 = bias_ref[2:3, :]
    b4 = bias_ref[3:4, :]
    b5t = bias_ref[8:16, 0:1]                # (8, 1) transposed head bias

    x = x_ref[...]                           # (TB, S), already cdt

    # fc1 + relu   (out 64 -> padded 128; padded lanes are relu(0+0)=0)
    h = jnp.dot(x, w1_ref[...], preferred_element_type=jnp.float32)
    h = jnp.maximum(h + b1, 0.0)                                  # (TB, 128) f32

    # fc2 + relu
    h1 = jnp.dot(h.astype(cdt), wslab_ref[0],
                 preferred_element_type=jnp.float32)
    h1 = jnp.maximum(h1 + b2, 0.0)

    # fc3 + residual + relu  (residual add kept in f32)
    h2 = jnp.dot(h1.astype(cdt), wslab_ref[1],
                 preferred_element_type=jnp.float32)
    h2 = jnp.maximum(h2 + b3 + h1, 0.0)

    # fc4 + relu   (out 64 -> padded 128)
    h3 = jnp.dot(h2.astype(cdt), wslab_ref[2],
                 preferred_element_type=jnp.float32)
    h3 = jnp.maximum(h3 + b4, 0.0)

    # fc5, feature-major: (8,128) contracted with (TB,128) on the feature dim
    # -> (8, TB).  Lanes run along the batch, so the mu store is lane-dense.
    w5t = wslab_ref[3][:HEAD, :]                                  # (8, 128)
    out_t = jax.lax.dot_general(
        w5t, h3.astype(cdt),
        dimension_numbers=(((1,), (1,)), ((), ())),
        preferred_element_type=jnp.float32)                       # (8, TB)

    # sigmoid routes to the EUP slot (VALU kept clear).
    mu_ref[...] = jax.nn.sigmoid(out_t + b5t)


def pack_params(params, compute_dtype=jnp.float32):
    """Zero-pad to 128 lanes and pack into 3 arrays: w1, weight slab, bias slab."""
    (w1, b1, w2, b2, w3, b3, w4, b4, w5, b5, _log_std) = params

    def padw(w):
        return jnp.pad(w, ((0, HID - w.shape[0]), (0, HID - w.shape[1])))

    def padb(b):
        b = b.reshape(1, -1)
        return jnp.pad(b, ((0, 0), (0, HID - b.shape[1])))

    w1p = jnp.pad(w1, ((0, 0), (0, HID - w1.shape[1])))           # (S, 128)

    # Head weight stored transposed: (64,3) -> (3,64) -> (8,128) -> slab row.
    w5t = jnp.pad(w5.T, ((0, HEAD - w5.shape[1]), (0, HID - w5.shape[0])))
    w5t_slab = jnp.pad(w5t, ((0, HID - HEAD), (0, 0)))            # (128, 128)
    wslab = jnp.stack([padw(w2), padw(w3), padw(w4), w5t_slab])   # (4,128,128)

    bias = jnp.zeros((16, HID), jnp.float32)                      # (16, 128)
    bias = bias.at[0:1].set(padb(b1))
    bias = bias.at[1:2].set(padb(b2))
    bias = bias.at[2:3].set(padb(b3))
    bias = bias.at[3:4].set(padb(b4))
    bias = bias.at[8:8 + b5.shape[-1], 0].set(b5.reshape(-1))     # b5^T column

    return w1p.astype(compute_dtype), wslab.astype(compute_dtype), bias


def policy_net_forward(x, params, *, batch_tile=1024, single_step_max=256,
                       compute_dtype=jnp.float32):
    """PolicyNet forward pass. Returns (mu: (B, 3), std: (3,))."""
    log_std = params[-1]
    # std does not depend on x: plain JAX, keeps the kernel grid 'parallel'.
    std = jnp.exp(jnp.clip(log_std, -20.0, 2.0)).reshape(-1)

    w1p, wslab, bias = pack_params(params, compute_dtype)
    B, S = x.shape

    if B <= single_step_max:
        # One grid step for the whole (sublane-rounded) batch.
        tile = max(8, _round_up(B, 8))
    else:
        # >= 2 lane-aligned tiles so the 'parallel' grid feeds both v7x TCs;
        # 512-1024 row tiles sit near the HBM roofline.
        tile = min(batch_tile, _round_up((B + 1) // 2, 128))
    Bp = _round_up(B, tile)
    n_tiles = Bp // tile

    xp = x if Bp == B else jnp.pad(x, ((0, Bp - B), (0, 0)))
    xp = xp.astype(compute_dtype)

    def resident(shape):
        # Whole-array block, same block every grid step (kept VMEM-resident).
        return pl.BlockSpec(shape, lambda i, _n=len(shape): (0,) * _n)

    item = jnp.dtype(compute_dtype).itemsize
    cost = pl.CostEstimate(
        flops=2 * Bp * (S * HID + 3 * HID * HID + HEAD * HID),
        transcendentals=HEAD * Bp,
        bytes_accessed=(item * (Bp * S + int(w1p.size) + int(wslab.size))
                        + 4 * int(bias.size) + 4 * HEAD * Bp),
    )

    mu_t = pl.pallas_call(
        policy_net_kernel,
        out_shape=jax.ShapeDtypeStruct((HEAD, Bp), jnp.float32),
        grid_spec=pltpu.PrefetchScalarGridSpec(
            num_scalar_prefetch=0,
            grid=(n_tiles,),
            in_specs=[
                pl.BlockSpec((tile, S), lambda i: (i, 0)),   # x batch tile
                resident(w1p.shape),
                resident(wslab.shape),
                resident(bias.shape),
            ],
            out_specs=pl.BlockSpec((HEAD, tile), lambda i: (0, i)),
        ),
        compiler_params=pltpu.CompilerParams(
            dimension_semantics=("parallel",)),
        cost_estimate=cost,
    )(xp, w1p, wslab, bias)

    # Trivial slice of the feature-major output, then transpose to (B, 3).
    mu = mu_t[:3, :B].T
    return mu, std


def init_params(key, state_dim):
    """Deterministic PyTorch-Linear-style init. Weights stored (in, out)."""
    dims = [(state_dim, 64), (64, 128), (128, 128), (128, 64), (64, 3)]
    params = []
    for (fan_in, fan_out) in dims:
        key, kw, kb = jax.random.split(key, 3)
        bound = 1.0 / jnp.sqrt(fan_in)
        w = jax.random.uniform(kw, (fan_in, fan_out), jnp.float32, -bound, bound)
        b = jax.random.uniform(kb, (1, fan_out), jnp.float32, -bound, bound)
        params += [w, b]
    log_std = jnp.zeros((1, 3), jnp.float32)   # torch.zeros(3) parameter
    params.append(log_std)
    return tuple(params)


def reference_forward(x, params):
    (w1, b1, w2, b2, w3, b3, w4, b4, w5, b5, log_std) = params
    h = jax.nn.relu(x @ w1 + b1)
    x1 = jax.nn.relu(h @ w2 + b2)
    x2 = jax.nn.relu(x1 @ w3 + b3 + x1)
    x3 = jax.nn.relu(x2 @ w4 + b4)
    out = x3 @ w5 + b5
    mu = jax.nn.sigmoid(out)
    std = jnp.exp(jnp.clip(log_std, -20.0, 2.0))[0]
    return mu, std


if __name__ == "__main__":
    key = jax.random.PRNGKey(0)
    state_dim = 32
    batch = 16

    kx, kp, kx2 = jax.random.split(key, 3)
    x = jax.random.normal(kx, (batch, state_dim), jnp.float32)
    params = init_params(kp, state_dim)

    # f32 path (default), small batch -> single grid step.
    mu, std = jax.block_until_ready(policy_net_forward(x, params))
    mu_ref, std_ref = reference_forward(x, params)
    assert mu.shape == (batch, 3) and std.shape == (3,)
    assert jnp.allclose(mu, mu_ref, atol=1e-5, rtol=1e-5)
    assert jnp.allclose(std, std_ref, atol=1e-6, rtol=1e-6)

    # Multi-tile path (>= 2 'parallel' grid steps, padded batch rows).
    x_big = jax.random.normal(kx2, (384, state_dim), jnp.float32)
    mu_b, _ = jax.block_until_ready(policy_net_forward(x_big, params))
    mu_b_ref, _ = reference_forward(x_big, params)
    assert jnp.allclose(mu_b, mu_b_ref, atol=1e-5, rtol=1e-5)

    # Optional bf16-MXU path (f32 accumulation) with relaxed tolerance.
    mu_h, _ = jax.block_until_ready(
        policy_net_forward(x, params, compute_dtype=jnp.bfloat16))
    assert jnp.allclose(mu_h, mu_ref, atol=2e-2, rtol=2e-2)

    print("KERNEL_OK")
</pallas_src>

<mosaic_0001>
module attributes {stable_mosaic.version = 11 : i64} {
  func.func @policy_net_kernel(%arg0: i32, %arg1: memref<16x32xf32, #tpu.memory_space<vmem>>, %arg2: memref<32x128xf32, #tpu.memory_space<vmem>>, %arg3: memref<4x128x128xf32, #tpu.memory_space<vmem>>, %arg4: memref<16x128xf32, #tpu.memory_space<vmem>>, %arg5: memref<8x16xf32, #tpu.memory_space<vmem>>) attributes {dimension_semantics = [#tpu.dimension_semantics<parallel>], iteration_bounds = array<i64: 1>, scalar_prefetch = 0 : i64, scratch_operands = 0 : i64, tpu.core_type = #tpu.core_type<tc>, window_params = [{transform_indices = @transform_0, window_bounds = array<i64: 16, 32>}, {pipeline_mode = #tpu.pipeline_mode<synchronous>, transform_indices = @transform_1, window_bounds = array<i64: 32, 128>}, {pipeline_mode = #tpu.pipeline_mode<synchronous>, transform_indices = @transform_2, window_bounds = array<i64: 4, 128, 128>}, {pipeline_mode = #tpu.pipeline_mode<synchronous>, transform_indices = @transform_3, window_bounds = array<i64: 16, 128>}, {transform_indices = @transform_4, window_bounds = array<i64: 8, 16>}]} {
    %c0 = arith.constant 0 : index
    %c0_0 = arith.constant 0 : index
    %0 = vector.load %arg4[%c0, %c0_0] : memref<16x128xf32, #tpu.memory_space<vmem>>, vector<1x128xf32>
    %c1 = arith.constant 1 : index
    %c0_1 = arith.constant 0 : index
    %1 = vector.load %arg4[%c1, %c0_1] : memref<16x128xf32, #tpu.memory_space<vmem>>, vector<1x128xf32>
    %c2 = arith.constant 2 : index
    %c0_2 = arith.constant 0 : index
    %2 = vector.load %arg4[%c2, %c0_2] : memref<16x128xf32, #tpu.memory_space<vmem>>, vector<1x128xf32>
    %c3 = arith.constant 3 : index
    %c0_3 = arith.constant 0 : index
    %3 = vector.load %arg4[%c3, %c0_3] : memref<16x128xf32, #tpu.memory_space<vmem>>, vector<1x128xf32>
    %c8 = arith.constant 8 : index
    %c0_4 = arith.constant 0 : index
    %4 = vector.load %arg4[%c8, %c0_4] : memref<16x128xf32, #tpu.memory_space<vmem>>, vector<8x1xf32>
    %c0_5 = arith.constant 0 : index
    %c0_6 = arith.constant 0 : index
    %5 = vector.load %arg1[%c0_5, %c0_6] : memref<16x32xf32, #tpu.memory_space<vmem>>, vector<16x32xf32>
    %c0_7 = arith.constant 0 : index
    %c0_8 = arith.constant 0 : index
    %6 = vector.load %arg2[%c0_7, %c0_8] : memref<32x128xf32, #tpu.memory_space<vmem>>, vector<32x128xf32>
    %cst = arith.constant dense<0.000000e+00> : vector<16x128xf32>
    %7 = tpu.matmul %5, %6, %cst {dimension_numbers = #tpu.dot_dimension_numbers<[1], [0], [0], [1], [0, 0, 1, 1], [], []>} : vector<16x32xf32>, vector<32x128xf32>, vector<16x128xf32> -> vector<16x128xf32>
    %8 = vector.broadcast %0 : vector<1x128xf32> to vector<16x128xf32>
    %9 = arith.addf %7, %8 : vector<16x128xf32>
    %cst_9 = arith.constant 0.000000e+00 : f32
    %10 = vector.broadcast %cst_9 : f32 to vector<16x128xf32>
    %11 = arith.maximumf %9, %10 : vector<16x128xf32>
    %c0_10 = arith.constant 0 : index
    %c0_11 = arith.constant 0 : index
    %c0_12 = arith.constant 0 : index
    %12 = vector.load %arg3[%c0_10, %c0_11, %c0_12] : memref<4x128x128xf32, #tpu.memory_space<vmem>>, vector<1x128x128xf32>
    %13 = vector.shape_cast %12 : vector<1x128x128xf32> to vector<128x128xf32>
    %cst_13 = arith.constant dense<0.000000e+00> : vector<16x128xf32>
    %14 = tpu.matmul %11, %13, %cst_13 {dimension_numbers = #tpu.dot_dimension_numbers<[1], [0], [0], [1], [0, 0, 1, 1], [], []>} : vector<16x128xf32>, vector<128x128xf32>, vector<16x128xf32> -> vector<16x128xf32>
    %15 = vector.broadcast %1 : vector<1x128xf32> to vector<16x128xf32>
    %16 = arith.addf %14, %15 : vector<16x128xf32>
    %cst_14 = arith.constant 0.000000e+00 : f32
    %17 = vector.broadcast %cst_14 : f32 to vector<16x128xf32>
    %18 = arith.maximumf %16, %17 : vector<16x128xf32>
    %c1_15 = arith.constant 1 : index
    %c0_16 = arith.constant 0 : index
    %c0_17 = arith.constant 0 : index
    %19 = vector.load %arg3[%c1_15, %c0_16, %c0_17] : memref<4x128x128xf32, #tpu.memory_space<vmem>>, vector<1x128x128xf32>
    %20 = vector.shape_cast %19 : vector<1x128x128xf32> to vector<128x128xf32>
    %cst_18 = arith.constant dense<0.000000e+00> : vector<16x128xf32>
    %21 = tpu.matmul %18, %20, %cst_18 {dimension_numbers = #tpu.dot_dimension_numbers<[1], [0], [0], [1], [0, 0, 1, 1], [], []>} : vector<16x128xf32>, vector<128x128xf32>, vector<16x128xf32> -> vector<16x128xf32>
    %22 = vector.broadcast %2 : vector<1x128xf32> to vector<16x128xf32>
    %23 = arith.addf %21, %22 : vector<16x128xf32>
    %24 = arith.addf %23, %18 : vector<16x128xf32>
    %cst_19 = arith.constant 0.000000e+00 : f32
    %25 = vector.broadcast %cst_19 : f32 to vector<16x128xf32>
    %26 = arith.maximumf %24, %25 : vector<16x128xf32>
    %c2_20 = arith.constant 2 : index
    %c0_21 = arith.constant 0 : index
    %c0_22 = arith.constant 0 : index
    %27 = vector.load %arg3[%c2_20, %c0_21, %c0_22] : memref<4x128x128xf32, #tpu.memory_space<vmem>>, vector<1x128x128xf32>
    %28 = vector.shape_cast %27 : vector<1x128x128xf32> to vector<128x128xf32>
    %cst_23 = arith.constant dense<0.000000e+00> : vector<16x128xf32>
    %29 = tpu.matmul %26, %28, %cst_23 {dimension_numbers = #tpu.dot_dimension_numbers<[1], [0], [0], [1], [0, 0, 1, 1], [], []>} : vector<16x128xf32>, vector<128x128xf32>, vector<16x128xf32> -> vector<16x128xf32>
    %30 = vector.broadcast %3 : vector<1x128xf32> to vector<16x128xf32>
    %31 = arith.addf %29, %30 : vector<16x128xf32>
    %cst_24 = arith.constant 0.000000e+00 : f32
    %32 = vector.broadcast %cst_24 : f32 to vector<16x128xf32>
    %33 = arith.maximumf %31, %32 : vector<16x128xf32>
    %c3_25 = arith.constant 3 : index
    %c0_26 = arith.constant 0 : index
    %c0_27 = arith.constant 0 : index
    %34 = vector.load %arg3[%c3_25, %c0_26, %c0_27] : memref<4x128x128xf32, #tpu.memory_space<vmem>>, vector<1x128x128xf32>
    %35 = vector.shape_cast %34 : vector<1x128x128xf32> to vector<128x128xf32>
    %36 = vector.extract_strided_slice %35 {offsets = [0, 0], sizes = [8, 128], strides = [1, 1]} : vector<128x128xf32> to vector<8x128xf32>
    %cst_28 = arith.constant dense<0.000000e+00> : vector<8x16xf32>
    %37 = tpu.matmul %36, %33, %cst_28 {dimension_numbers = #tpu.dot_dimension_numbers<[1], [1], [0], [0], [0, 0, 1, 0], [], []>} : vector<8x128xf32>, vector<16x128xf32>, vector<8x16xf32> -> vector<8x16xf32>
    %38 = vector.broadcast %4 : vector<8x1xf32> to vector<8x16xf32>
    %39 = arith.addf %37, %38 : vector<8x16xf32>
    %40 = arith.negf %39 : vector<8x16xf32>
    %41 = math.exp %40 : vector<8x16xf32>
    %cst_29 = arith.constant 1.000000e+00 : f32
    %42 = vector.broadcast %cst_29 : f32 to vector<8x16xf32>
    %43 = arith.addf %42, %41 : vector<8x16xf32>
    %44 = arith.divf %42, %43 : vector<8x16xf32>
    %c0_30 = arith.constant 0 : index
    %c0_31 = arith.constant 0 : index
    %45 = vector.load %arg5[%c0_30, %c0_31] : memref<8x16xf32, #tpu.memory_space<vmem>>, vector<8x16xf32>
    tpu.vector_store %arg5[%c0_30, %c0_31], %44 {strides = array<i32>} : memref<8x16xf32, #tpu.memory_space<vmem>>, vector<8x16xf32>,
    return
  }
  func.func @transform_0(%arg0: i32) -> (i32, i32) {
    %c0_i32 = arith.constant 0 : i32
    %c0_i32_0 = arith.constant 0 : i32
    return %arg0, %c0_i32 : i32, i32
  }
  func.func @transform_1(%arg0: i32) -> (i32, i32) {
    %c0_i32 = arith.constant 0 : i32
    %c0_i32_0 = arith.constant 0 : i32
    %c0_i32_1 = arith.constant 0 : i32
    return %c0_i32, %c0_i32_0 : i32, i32
  }
  func.func @transform_2(%arg0: i32) -> (i32, i32, i32) {
    %c0_i32 = arith.constant 0 : i32
    %c0_i32_0 = arith.constant 0 : i32
    %c0_i32_1 = arith.constant 0 : i32
    %c0_i32_2 = arith.constant 0 : i32
    return %c0_i32, %c0_i32_0, %c0_i32_1 : i32, i32, i32
  }
  func.func @transform_3(%arg0: i32) -> (i32, i32) {
    %c0_i32 = arith.constant 0 : i32
    %c0_i32_0 = arith.constant 0 : i32
    %c0_i32_1 = arith.constant 0 : i32
    return %c0_i32, %c0_i32_0 : i32, i32
  }
  func.func @transform_4(%arg0: i32) -> (i32, i32) {
    %c0_i32 = arith.constant 0 : i32
    %c0_i32_0 = arith.constant 0 : i32
    return %c0_i32, %arg0 : i32, i32
  }
}

</mosaic_0001>

<bundles_post_ra>
// kernel: tpu_custom_call.1
= control target key start
LH: loop header
LB: loop body
LE: loop exit
PB: predicated region body
PF: predicated region fallthrough
CT: control target
= control target key end

     0   :  { %9 = vsyncpa [#allocation3], 0  ;;  %s518_s0 = inlined_call_operand.hbm [shape: f32[16,32], index: 0, kind: input, shape index: {}]   ;;  %s519_s1 = inlined_call_operand.hbm [shape: f32[32,128], index: 1, kind: input, shape index: {}]   ;;  %s520_s2 = inlined_call_operand.hbm [shape: f32[4,128,128], index: 2, kind: input, shape index: {}]   ;;  %s521_s3 = inlined_call_operand.hbm [shape: f32[16,128], index: 3, kind: input, shape index: {}]   ;;  %s522_s4 = inlined_call_operand.hbm [shape: f32[8,16], index: 4, kind: output, shape index: {}]  }
   0x1   :  { %10 = vsyncpa [#allocation6], 0 }
   0x2   :  { %11 = vsyncpa [#allocation9], 0 }
   0x3   :  { %12 = vsyncpa [#allocation4], 0  ;;  %s30_s17 = sshll.u32 %s519_s1, 4  ;;  %s470_s18 = smov [#allocation5]   ;;  %s31_s17 = int_to_ptr.hbm [resolvable:$true] %s30_s17 }
   0x4   :  { %s32_s19 = sshll.u32 %s470_s18, 4  ;;  %s17_s22 = sshll.u32 %s518_s0, 4  ;;  %s33_s19 = int_to_ptr.vmem [resolvable:$true] %s32_s19  ;;  %s18_s22 = int_to_ptr.hbm [resolvable:$true] %s17_s22 }
   0x5   :  { %s471_s23 = smov 128   ;;  %s472_s24 = smov 8  }
   0x6   :  { %38 = dma.hbm_to_vmem [thread:$0]  %s31_s17, 512, %s33_s19, [#allocation6], %s471_s23, %s471_s23, %s472_s24  }
   0x7   :  { %s473_s25 = smov [#allocation2]   ;;  %s43_s29 = sshll.u32 %s520_s2, 4  ;;  %s44_s29 = int_to_ptr.hbm [resolvable:$true] %s43_s29 }
   0x8   :  { %s19_s26 = sshll.u32 %s473_s25, 4  ;;  %s56_s5 = sshll.u32 %s521_s3, 4  ;;  %s20_s26 = int_to_ptr.vmem [resolvable:$true] %s19_s26  ;;  %s57_s5 = int_to_ptr.hbm [resolvable:$true] %s56_s5 }
   0x9   :  { %25 = dma.hbm_to_vmem [thread:$0]  %s18_s22, 256, %s20_s26, [#allocation3], %s471_s23, %s471_s23, %s472_s24  }
   0xa   :  { %s474_s6 = smov [#allocation7]   ;;  %s475_s0 = smov [#allocation8]  }
   0xb   :  { %s45_s7 = sshll.u32 %s474_s6, 4  ;;  %s58_s8 = sshll.u32 %s475_s0, 4  ;;  %s46_s7 = int_to_ptr.vmem [resolvable:$true] %s45_s7  ;;  %s59_s8 = int_to_ptr.vmem [resolvable:$true] %s58_s8 }
   0xc   :  { %51 = dma.hbm_to_vmem [thread:$0]  %s44_s29, 8192, %s46_s7, [#allocation6], %s471_s23, %s471_s23, %s472_s24  }
   0xd   :  { %64 = dma.hbm_to_vmem [thread:$0]  %s57_s5, 256, %s59_s8, [#allocation9], %s471_s23, %s471_s23, %s472_s24  }
   0xe   :  { %462 = dma.done.wait [#allocation3], 256  }
   0xf   :  { %463 = vsyncadd [#allocation3], 4294967040 }
  0x10   :  { %464 = dma.done.wait [#allocation6], 8704  }
  0x11   :  { %465 = vsyncadd [#allocation6], 4294958592 }
  0x12   :  { %466 = dma.done.wait [#allocation9], 256  }
  0x13   :  { %467 = vsyncadd [#allocation9], 4294967040  ;;  %v91_v0 = vld [vmem:[#allocation5 + $0x18] sm:$0xff]  ;;  %v90_v1 = vld [vmem:[#allocation5 + $0x10] sm:$0xff]  ;;  %vm93_vm0 = vcmask 261120   ;;  %s477_s2 = smov [#allocation10]  }
  0x14   :  { %112 = vmatpush.msra.mxu0 %v91_v0  ;;  %v89_v2 = vld [vmem:[#allocation5 + $0x8] sm:$0xff]  ;;  %v140_v3 = vld [vmem:[#allocation7 + $0x78] sm:$0xff]  ;;  %v139_v4 = vld [vmem:[#allocation7 + $0x70] sm:$0xff]  ;;  %s308_s3 = sshll.u32 %s477_s2, 4  ;;  %s310_s11 = sshll.u32 %s522_s4, 4  ;;  %vm301_vm4 = vcmask 130048   ;;  %s309_s3 = int_to_ptr.vmem [resolvable:$true] %s308_s3  ;;  %s311_s11 = int_to_ptr.hbm [resolvable:$true] %s310_s11 }
  0x15   :  { %142 = vmatpush.msra.mxu1 %v140_v3  ;;  %v88_v5 = vld [vmem:[#allocation5] sm:$0xff]  ;;  %v138_v6 = vld [vmem:[#allocation7 + $0x68] sm:$0xff]  ;;  %v86_v7 = vld [vmem:[#allocation2] sm:$0xff] }
  0x16   :  { %113 = vmatpush.msra.mxu0 %v90_v1  ;;  %v137_v8 = vld [vmem:[#allocation7 + $0x60] sm:$0xff]  ;;  %v136_v9 = vld [vmem:[#allocation7 + $0x58] sm:$0xff]  ;;  %v135_v10 = vld [vmem:[#allocation7 + $0x50] sm:$0xff] }
  0x17   :  { %143 = vmatpush.msra.mxu1 %v139_v4  ;;  %v134_v11 = vld [vmem:[#allocation7 + $0x48] sm:$0xff]  ;;  %v87_v12 = vld [vmem:[#allocation2 + $0x8] sm:$0xff]  ;;  %v133_v13 = vld [vmem:[#allocation7 + $0x40] sm:$0xff] }
  0x18   :  { %114 = vmatpush.msra.mxu0 %v89_v2  ;;  %v132_v14 = vld [vmem:[#allocation7 + $0x38] sm:$0xff]  ;;  %v131_v15 = vld [vmem:[#allocation7 + $0x30] sm:$0xff]  ;;  %v130_v16 = vld [vmem:[#allocation7 + $0x28] sm:$0xff] }
  0x19   :  { %144 = vmatpush.msra.mxu1 %v138_v6  ;;  %v129_v17 = vld [vmem:[#allocation7 + $0x20] sm:$0xff]  ;;  %v128_v18 = vld [vmem:[#allocation7 + $0x18] sm:$0xff]  ;;  %v127_v19 = vld [vmem:[#allocation7 + $0x10] sm:$0xff] }
  0x1a   :  { %115 = vmatpush.msra.mxu0 %v88_v5  ;;  %v126_v20 = vld [vmem:[#allocation7 + $0x8] sm:$0xff]  ;;  %v125_v21 = vld [vmem:[#allocation7] sm:$0xff]  ;;  %v183_v22 = vld [vmem:[#allocation7 + $0xf8] sm:$0xff] }
  0x1b   :  { %322 = vmatmul.msk.f32.vlgmr.msra.gmra.mxu0 %vm93_vm0, %v86_v7  ;;  %145 = vmatpush.msra.mxu1 %v137_v8  ;;  %v182_v23 = vld [vmem:[#allocation7 + $0xf0] sm:$0xff]  ;;  %v181_v24 = vld [vmem:[#allocation7 + $0xe8] sm:$0xff]  ;;  %v180_v25 = vld [vmem:[#allocation7 + $0xe0] sm:$0xff] }
  0x1c   :  { %185 = vmatpush.msra.mxu2 %v183_v22  ;;  %v179_v26 = vld [vmem:[#allocation7 + $0xd8] sm:$0xff]  ;;  %v178_v27 = vld [vmem:[#allocation7 + $0xd0] sm:$0xff]  ;;  %v177_v28 = vld [vmem:[#allocation7 + $0xc8] sm:$0xff] }
  0x1d   :  { %146 = vmatpush.msra.mxu1 %v136_v9  ;;  %v176_v29 = vld [vmem:[#allocation7 + $0xc0] sm:$0xff]  ;;  %v175_v30 = vld [vmem:[#allocation7 + $0xb8] sm:$0xff]  ;;  %v174_v32 = vld [vmem:[#allocation7 + $0xb0] sm:$0xff] }
  0x1e   :  { %186 = vmatpush.msra.mxu2 %v182_v23  ;;  %v334_v31 = vld [vmem:[#allocation8] ss:$0 sm:$0xff]  ;;  %v173_v33 = vld [vmem:[#allocation7 + $0xa8] sm:$0xff]  ;;  %v171_v38 = vld [vmem:[#allocation7 + $0x98] sm:$0xff] }
  0x1f   :  { %147 = vmatpush.msra.mxu1 %v135_v10  ;;  %v172_v36 = vld [vmem:[#allocation7 + $0xa0] sm:$0xff]  ;;  %v170_v42 = vld [vmem:[#allocation7 + $0x90] sm:$0xff]  ;;  %v169_v43 = vld [vmem:[#allocation7 + $0x88] sm:$0xff] }
  0x20   :  { %187 = vmatpush.msra.mxu2 %v181_v24  ;;  %v168_v44 = vld [vmem:[#allocation7 + $0x80] sm:$0xff]  ;;  %v228_v45 = vld [vmem:[#allocation7 + $0x178] sm:$0xff]  ;;  %v227_v46 = vld [vmem:[#allocation7 + $0x170] sm:$0xff] }
  0x21   :  { %148 = vmatpush.msra.mxu1 %v134_v11  ;;  %230 = vmatpush.msra.mxu3 %v228_v45  ;;  %v226_v47 = vld [vmem:[#allocation7 + $0x168] sm:$0xff]  ;;  %v225_v48 = vld [vmem:[#allocation7 + $0x160] sm:$0xff]  ;;  %v224_v49 = vld [vmem:[#allocation7 + $0x158] sm:$0xff] }
  0x22   :  { %188 = vmatpush.msra.mxu2 %v180_v25  ;;  %v223_v50 = vld [vmem:[#allocation7 + $0x150] sm:$0xff]  ;;  %v222_v51 = vld [vmem:[#allocation7 + $0x148] sm:$0xff]  ;;  %v221_v52 = vld [vmem:[#allocation7 + $0x140] sm:$0xff] }
  0x23   :  { %323 = vmatmul.msk.f32.gmra.mxu0 %vm93_vm0, %v87_v12  ;;  %149 = vmatpush.msra.mxu1 %v133_v13  ;;  %v220_v53 = vld [vmem:[#allocation7 + $0x138] sm:$0xff]  ;;  %v335_v54 = vld [vmem:[#allocation8 + $0x1] ss:$0 sm:$0xff]  ;;  %v219_v55 = vld [vmem:[#allocation7 + $0x130] sm:$0xff] }
  0x24   :  { %189 = vmatpush.msra.mxu2 %v179_v26  ;;  %231 = vmatpush.msra.mxu3 %v227_v46  ;;  %v218_v56 = vld [vmem:[#allocation7 + $0x128] sm:$0xff]  ;;  %v217_v59 = vld [vmem:[#allocation7 + $0x120] sm:$0xff]  ;;  %v216_v0 = vld [vmem:[#allocation7 + $0x118] sm:$0xff] }
  0x25   :  { %150 = vmatpush.msra.mxu1 %v132_v14  ;;  %v215_v1 = vld [vmem:[#allocation7 + $0x110] sm:$0xff]  ;;  %v214_v2 = vld [vmem:[#allocation7 + $0x108] sm:$0xff]  ;;  %v213_v3 = vld [vmem:[#allocation7 + $0x100] sm:$0xff]  ;;  %v476_v14 = vmov 0  }
  0x26   :  { %190 = vmatpush.msra.mxu2 %v178_v27  ;;  %232 = vmatpush.msra.mxu3 %v226_v47  ;;  %v336_v4 = vld [vmem:[#allocation8 + $0x2] ss:$0 sm:$0xff]  ;;  %v85_v13 = vld [vmem:[#allocation8 + $0x8] sm:$0xff] }
  0x27   :  { %151 = vmatpush.msra.mxu1 %v131_v15  ;;  %333 = vset.pattern.permute.xlu0 %v476_v14  ;;  %v256_v22 = vld [vmem:[#allocation7 + $0x180] sm:$0xff] }
  0x28   :  { %191 = vmatpush.msra.mxu2 %v177_v28  ;;  %233 = vmatpush.msra.mxu3 %v225_v48 }
  0x29   :  { %152 = vmatpush.msra.mxu1 %v130_v16  ;;  %259 = vperm.xlu0 %333, %v85_v13   ;;  %v337_v16 = vld [vmem:[#allocation8 + $0x3] ss:$0 sm:$0xff] }
  0x2a   :  { %192 = vmatpush.msra.mxu2 %v176_v29  ;;  %234 = vmatpush.msra.mxu3 %v224_v49 }
  0x2b   :  { %153 = vmatpush.msra.mxu1 %v129_v17 }
  0x2c   :  { %193 = vmatpush.msra.mxu2 %v175_v30  ;;  %235 = vmatpush.msra.mxu3 %v223_v50 }
  0x2d   :  { %154 = vmatpush.msra.mxu1 %v128_v18 }
  0x2e   :  { %194 = vmatpush.msra.mxu2 %v174_v32  ;;  %236 = vmatpush.msra.mxu3 %v222_v51 }
  0x2f   :  { %155 = vmatpush.msra.mxu1 %v127_v19 }
  0x30   :  { %195 = vmatpush.msra.mxu2 %v173_v33  ;;  %237 = vmatpush.msra.mxu3 %v221_v52 }
  0x31   :  { %156 = vmatpush.msra.mxu1 %v126_v20 }
  0x32   :  { %196 = vmatpush.msra.mxu2 %v172_v36  ;;  %238 = vmatpush.msra.mxu3 %v220_v53 }
  0x33   :  { %157 = vmatpush.msra.mxu1 %v125_v21 }
  0x34   :  { %197 = vmatpush.msra.mxu2 %v171_v38  ;;  %239 = vmatpush.msra.mxu3 %v219_v55 }
  0x36   :  { %198 = vmatpush.msra.mxu2 %v170_v42  ;;  %240 = vmatpush.msra.mxu3 %v218_v56 }
  0x38   :  { %199 = vmatpush.msra.mxu2 %v169_v43  ;;  %241 = vmatpush.msra.mxu3 %v217_v59 }
  0x3a   :  { %200 = vmatpush.msra.mxu2 %v168_v44  ;;  %242 = vmatpush.msra.mxu3 %v216_v0 }
  0x3c   :  { %243 = vmatpush.msra.mxu3 %v215_v1 }
  0x3e   :  { %244 = vmatpush.msra.mxu3 %v214_v2 }
  0x40   :  { %245 = vmatpush.msra.mxu3 %v213_v3 }
  0x98   :  { %v117_v34 = vpop.f32.mrf.mxu0 }
  0x99   :  { %v118_v35 = vadd.f32 %v334_v31, %v117_v34 }
  0x9b   :  { %v123_v37 = vmax.f32 %v118_v35, 0.0  ;;  %v260_v23 = vpop.permute.xlu0 %259 }
  0x9d   :  { %158 = vmatmul.f32.vlgmr.msra.gmra.mxu1 %v123_v37 }
  0xa0   :  { %v120_v39 = vpop.f32.mrf.mxu0 }
  0xa1   :  { %v121_v40 = vadd.f32 %v334_v31, %v120_v39 }
  0xa3   :  { %v124_v41 = vmax.f32 %v121_v40, 0.0 }
  0xa5   :  { %161 = vmatmul.f32.gmra.mxu1 %v124_v41 }
 0x11a   :  { %v159_v57 = vpop.f32.mrf.mxu1 }
 0x11b   :  { %v160_v58 = vadd.f32 %v335_v54, %v159_v57 }
 0x11d   :  { %v165_v60 = vmax.f32 %v160_v58, 0.0 }
 0x11f   :  { %201 = vmatmul.f32.vlgmr.msra.gmra.mxu2 %v165_v60 }
 0x122   :  { %v162_v61 = vpop.f32.mrf.mxu1 }
 0x123   :  { %v163_v62 = vadd.f32 %v335_v54, %v162_v61 }
 0x125   :  { %v166_v63 = vmax.f32 %v163_v62, 0.0 }
 0x127   :  { %204 = vmatmul.f32.gmra.mxu2 %v166_v63 }
 0x1a2   :  { %v202_v5 = vpop.f32.mrf.mxu2 }
 0x1a3   :  { %v203_v6 = vadd.f32 %v336_v4, %v202_v5 }
 0x1a5   :  { %v208_v7 = vadd.f32 %v203_v6, %v165_v60 }
 0x1a7   :  { %v210_v8 = vmax.f32 %v208_v7, 0.0 }
 0x1a9   :  { %246 = vmatmul.f32.vlgmr.msra.gmra.mxu3 %v210_v8 }
 0x1aa   :  { %v205_v9 = vpop.f32.mrf.mxu2 }
 0x1ab   :  { %v206_v10 = vadd.f32 %v336_v4, %v205_v9 }
 0x1ad   :  { %v209_v11 = vadd.f32 %v206_v10, %v166_v63 }
 0x1af   :  { %v211_v12 = vmax.f32 %v209_v11, 0.0 }
 0x1b1   :  { %249 = vmatmul.f32.gmra.mxu3 %v211_v12 }
 0x22c   :  { %v247_v15 = vpop.f32.mrf.mxu3 }
 0x22d   :  { %v248_v19 = vadd.f32 %v337_v16, %v247_v15 }
 0x22f   :  { %v253_v21 = vmax.f32 %v248_v19, 0.0 }
 0x234   :  { %v250_v17 = vpop.f32.mrf.mxu3 }
 0x235   :  { %v251_v18 = vadd.f32 %v337_v16, %v250_v17 }
 0x237   :  { %v254_v20 = vmax.f32 %v251_v18, 0.0 }
 0x239   :  { %276 = vmatpush.xpose.msrb.mxu0 %v254_v20 }
 0x23d   :  { %277 = vmatpush.xpose.msrb.mxu0 %v253_v21 }
 0x240   :  { %278 = vmatmul.f32.vlgmr.msrb.gmra.mxu0 %v256_v22 }
 0x2bd   :  { %v279_v24 = vpop.f32.mrf.mxu0 }
 0x2be   :  { %v280_v25 = vadd.f32 %v279_v24, %v260_v23 }
 0x2c0   :  { %v324_v26 = vmul.f32 -1.442695, %v280_v25 }
 0x2c2   :  { %338 = vpow2.f32 %v324_v26 }
 0x2c8   :  { %v339_v27 = vpop.eup %338 }
 0x2c9   :  { %v285_v28 = vadd.f32 1.0, %v339_v27 }
 0x2cb   :  { %340 = vrcp.f32 %v285_v28  ;;  %v297_v32 = vand.u32 2147483648, %v285_v28  ;;  %v295_v34 = vand.u32 2147483647, %v285_v28  ;;  %vm291_vm2 = vweird.f32 %v285_v28 }
 0x2cd   :  { %v298_v36 = vor.u32 1.1754944e-38, %v297_v32  ;;  %vm296_vm5 = vcmp.eq.f32.partialorder %v295_v34, 8.507059e+37 }
 0x2d1   :  { %v341_v29 = vpop.eup %340 }
 0x2d2   :  { %v287_v30 = vmul.f32 %v341_v29, %v285_v28  ;;  %vm292_vm1 = vweird.f32 %v341_v29 }
 0x2d3   :  { %vm293_vm3 = vmor %vm291_vm2, %vm292_vm1 }
 0x2d4   :  { %v288_v31 = vsub.f32 1.0, %v287_v30 }
 0x2d6   :  { %v289_v33 = vmul.f32 %v341_v29, %v288_v31 }
 0x2d8   :  { %v290_v35 = vadd.f32 %v341_v29, %v289_v33 }
 0x2da   :  { %v294_v37 = vsel %vm293_vm3, %v341_v29, %v290_v35 }
 0x2db   :  { %v299_v38 = vsel %vm296_vm5, %v298_v36, %v294_v37 }
 0x2dc   :  { %302 = vst.msk [vmem:[#allocation10] sm:$0xff] %vm301_vm4, %v299_v38 }
 0x2dd   :  { %313 = dma.vmem_to_hbm [thread:$0]  %s309_s3, 128, %s311_s11, [#allocation4]  }
 0x2de   :  { %468 = dma.done.wait [#allocation4], 128  }
 0x2df   :  { %469 = vsyncadd [#allocation4], 4294967168 }
 0x2e0   :  { %318 = vsyncpa [#allocation3], 1 }
 0x2e1   :  { %319 = vsyncpa [#allocation6], 1 }
 0x2e2   :  { %320 = vsyncpa [#allocation9], 1 }
 0x2e3   :  { %321 = vsyncpa [#allocation4], 1 }

</bundles_post_ra>
